<compile_context>
chip_gen: v7x
topology: tpu7x:2x2x1
jax: 0.10.0
libtpu: 0.0.40
codegen_flags: <defaults>
</compile_context>

<pallas_src>
import jax
import jax.numpy as jnp
from jax.experimental import pallas as pl
from jax.experimental.pallas import tpu as pltpu


_TARGET_CHUNK_BYTES = 16 * 1024 * 1024   # >= ~16 MiB per DMA chunk
_ALIGN_BYTES = 4096                      # chunk-start byte-alignment granule
_SMALL_INPUT_BYTES = 1 << 20             # below 1 MiB, skip the Pallas launch


def _max_chunks():
    """More concurrent DMAs on v7x (~3.2 TB/s HBM) than on v5e/v6e."""
    try:
        kind = jax.devices()[0].device_kind.lower()
    except Exception:
        kind = ""
    return 16 if ("v7" in kind or "7x" in kind) else 8


def _chunk_plan(leading, row_bytes, total_bytes):
    """Split the leading axis into a few contiguous (start_row, num_rows)
    chunks (all static Python ints).

    All chunks except the last have a row count that is a multiple of the
    alignment granule, so every DMA starts at an aligned byte offset and runs
    at full line rate on every TPU generation."""
    n = int(max(1, min(_max_chunks(),
                       pl.cdiv(total_bytes, _TARGET_CHUNK_BYTES),
                       leading)))
    if n == 1:
        return [(0, leading)]
    # Rows per alignment granule (>= 1).
    granule_rows = max(1, -(-_ALIGN_BYTES // row_bytes))        # ceil div
    rows_per_chunk = -(-leading // n)                           # ceil(leading/n)
    rows_per_chunk = -(-rows_per_chunk // granule_rows) * granule_rows
    chunks = []
    start = 0
    while start < leading:
        size = min(rows_per_chunk, leading - start)
        chunks.append((start, size))
        start += size
    return chunks


def _make_identity_dma_kernel(chunks):
    """Kernel body: issue all HBM->HBM chunk copies, then wait on all of them.
    Purely DMA-engine / HBM-bandwidth bound; nothing touches VMEM or the VPU."""

    def kernel(x_hbm, o_hbm, sems):
        copies = []
        for c, (start, size) in enumerate(chunks):
            cp = pltpu.make_async_copy(
                x_hbm.at[pl.ds(start, size)],
                o_hbm.at[pl.ds(start, size)],
                sems.at[c],
            )
            cp.start()
            copies.append(cp)
        for cp in copies:
            cp.wait()

    return kernel


def identity_copy_pallas(x, *, force_pallas=False):
    """Materializing identity: bit-exact copy of x produced by a Pallas kernel
    doing chunked HBM->HBM DMA on the native-shape array (no VMEM staging, no
    wrapper reshapes)."""
    if x.size == 0 or x.ndim == 0:
        return x

    itemsize = jnp.dtype(x.dtype).itemsize
    total_bytes = x.size * itemsize
    if not force_pallas and total_bytes < _SMALL_INPUT_BYTES:
        # Kernel-dispatch overhead dominates for tiny tensors; identity is x.
        return x

    leading = x.shape[0]
    row_bytes = (x.size // leading) * itemsize
    chunks = _chunk_plan(leading, row_bytes, total_bytes)

    return pl.pallas_call(
        _make_identity_dma_kernel(chunks),
        out_shape=jax.ShapeDtypeStruct(x.shape, x.dtype),
        in_specs=[pl.BlockSpec(memory_space=pl.ANY)],
        out_specs=pl.BlockSpec(memory_space=pl.ANY),
        scratch_shapes=[pltpu.SemaphoreType.DMA((len(chunks),))],
        cost_estimate=pl.CostEstimate(
            flops=0,
            transcendentals=0,
            bytes_accessed=2 * total_bytes,
        ),
    )(x)


def identity_forward(x):
    """Identity forward (DARTS `Identity.forward`): zero-copy pass-through.
    Fastest possible implementation (zero bytes moved) on every TPU."""
    return x


def identity_forward_wsbn(x, prev_id):
    # forward_wsbn ignores prev_id and calls forward.
    return identity_forward(x)


if __name__ == "__main__":
    key = jax.random.PRNGKey(0)
    # NCHW input, small shape consistent with a conv-net feature map.
    x = jax.random.normal(key, (2, 4, 16, 16), dtype=jnp.float32)

    # Zero-copy forward path (the hot path).
    y = jax.block_until_ready(identity_forward(x))
    assert y.shape == x.shape and y.dtype == x.dtype
    assert bool(jnp.array_equal(y, x))

    # forward_wsbn path.
    y2 = jax.block_until_ready(identity_forward_wsbn(x, prev_id=0))
    assert bool(jnp.array_equal(y2, x))

    # Mandated Pallas kernel path: chunked HBM->HBM DMA copy on native shape.
    # force_pallas=True so the kernel actually runs despite the tiny size.
    y3 = jax.block_until_ready(identity_copy_pallas(x, force_pallas=True))
    assert y3.shape == x.shape and y3.dtype == x.dtype
    assert bool(jnp.array_equal(y3, x))

    # Shape that is NOT a multiple of 128 anywhere -- handled uniformly by the
    # leading-axis chunked DMA (no VMEM block, no tiling constraints).
    x_odd = jax.random.normal(
        jax.random.PRNGKey(1), (3, 5, 7, 11), dtype=jnp.float32
    )
    y_odd = jax.block_until_ready(identity_copy_pallas(x_odd, force_pallas=True))
    assert bool(jnp.array_equal(y_odd, x_odd))

    # Small-input short circuit returns the input itself (identity semantics).
    y_small = jax.block_until_ready(identity_copy_pallas(x))
    assert bool(jnp.array_equal(y_small, x))

    # Static sanity check of the aligned chunk planner (no big allocation):
    # hypothetical (1024, 1, 224, 224) f32 tensor -> multiple aligned chunks.
    plan = _chunk_plan(1024, 224 * 224 * 4, 1024 * 224 * 224 * 4)
    assert sum(s for _, s in plan) == 1024
    assert all(plan[i][0] + plan[i][1] == plan[i + 1][0]
               for i in range(len(plan) - 1))
    assert len(plan) > 1

    print("KERNEL_OK")
</pallas_src>

<mosaic_0001>
module attributes {stable_mosaic.version = 11 : i64} {
  func.func @kernel(%arg0: memref<2x4x16x16xf32, #tpu.memory_space<any>>, %arg1: memref<2x4x16x16xf32, #tpu.memory_space<any>>, %arg2: memref<1x!tpu.dma_semaphore, #tpu.memory_space<semaphore_mem>>) attributes {dimension_semantics = [], scalar_prefetch = 0 : i64, scratch_operands = 1 : i64, tpu.core_type = #tpu.core_type<tc>} {
    %c0_i32 = arith.constant 0 : i32
    %c0_i32_0 = arith.constant 0 : i32
    %c0_i32_1 = arith.constant 0 : i32
    %c0_i32_2 = arith.constant 0 : i32
    %c0_i32_3 = arith.constant 0 : i32
    %0 = tpu.memref_slice %arg0[%c0_i32_0, %c0_i32_1, %c0_i32_2, %c0_i32_3] : memref<2x4x16x16xf32, #tpu.memory_space<any>> -> memref<2x4x16x16xf32, #tpu.memory_space<any>>
    %c0_i32_4 = arith.constant 0 : i32
    %c0_i32_5 = arith.constant 0 : i32
    %c0_i32_6 = arith.constant 0 : i32
    %c0_i32_7 = arith.constant 0 : i32
    %1 = tpu.memref_slice %arg1[%c0_i32_4, %c0_i32_5, %c0_i32_6, %c0_i32_7] : memref<2x4x16x16xf32, #tpu.memory_space<any>> -> memref<2x4x16x16xf32, #tpu.memory_space<any>>
    %2 = tpu.memref_slice %arg2[%c0_i32] : memref<1x!tpu.dma_semaphore, #tpu.memory_space<semaphore_mem>> -> memref<1x!tpu.dma_semaphore, #tpu.memory_space<semaphore_mem>>
    %3 = tpu.memref_squeeze %2 : memref<1x!tpu.dma_semaphore, #tpu.memory_space<semaphore_mem>> -> memref<!tpu.dma_semaphore, #tpu.memory_space<semaphore_mem>>
    tpu.enqueue_dma source(%0 : memref<2x4x16x16xf32, #tpu.memory_space<any>>) target(%1 : memref<2x4x16x16xf32, #tpu.memory_space<any>>) target_semaphore(%3 : memref<!tpu.dma_semaphore, #tpu.memory_space<semaphore_mem>>)
    %c0_i32_8 = arith.constant 0 : i32
    %c0_i32_9 = arith.constant 0 : i32
    %c0_i32_10 = arith.constant 0 : i32
    %c0_i32_11 = arith.constant 0 : i32
    %c0_i32_12 = arith.constant 0 : i32
    %4 = tpu.memref_slice %arg0[%c0_i32_9, %c0_i32_10, %c0_i32_11, %c0_i32_12] : memref<2x4x16x16xf32, #tpu.memory_space<any>> -> memref<2x4x16x16xf32, #tpu.memory_space<any>>
    %c0_i32_13 = arith.constant 0 : i32
    %c0_i32_14 = arith.constant 0 : i32
    %c0_i32_15 = arith.constant 0 : i32
    %c0_i32_16 = arith.constant 0 : i32
    %5 = tpu.memref_slice %arg1[%c0_i32_13, %c0_i32_14, %c0_i32_15, %c0_i32_16] : memref<2x4x16x16xf32, #tpu.memory_space<any>> -> memref<2x4x16x16xf32, #tpu.memory_space<any>>
    %6 = tpu.memref_slice %arg2[%c0_i32_8] : memref<1x!tpu.dma_semaphore, #tpu.memory_space<semaphore_mem>> -> memref<1x!tpu.dma_semaphore, #tpu.memory_space<semaphore_mem>>
    %7 = tpu.memref_squeeze %6 : memref<1x!tpu.dma_semaphore, #tpu.memory_space<semaphore_mem>> -> memref<!tpu.dma_semaphore, #tpu.memory_space<semaphore_mem>>
    tpu.wait_dma2 semaphore(%7 : memref<!tpu.dma_semaphore, #tpu.memory_space<semaphore_mem>>) src(%4 : memref<2x4x16x16xf32, #tpu.memory_space<any>>) dst(%5 : memref<2x4x16x16xf32, #tpu.memory_space<any>>)
    return
  }
}

</mosaic_0001>

<bundles_post_ra>
// kernel: tpu_custom_call.1
= control target key start
LH: loop header
LB: loop body
LE: loop exit
PB: predicated region body
PF: predicated region fallthrough
CT: control target
= control target key end

     0   :  { %s36_s6 = smov [#allocation2]   ;;  %s37_s7 = smov [#allocation3]   ;;  %s55_s0 = inlined_call_operand.hbm [shape: f32[2,4,16,16], index: 0, kind: input, shape index: {}]   ;;  %s56_s1 = inlined_call_operand.hbm [shape: f32[2,4,16,16], index: 1, kind: output, shape index: {}]  }
   0x1   :  { %s38_s8 = smov 0  }
   0x2   :  { %18 = dma.general %s55_s0, 2048, %s56_s1, %s36_s6, %s37_s7, [#allocation4], %s38_s8, 0  }
   0x3   :  { %34 = dma.done.wait [#allocation2], 2048 }
   0x4   :  { %35 = vsyncadd [#allocation2], 4294965248 }
   0x5   :  { %24 = vsyncmov [#allocation2] }
   0x8   :  { %s25_s13 = vpop.sfrf %24 }
   0x9   :  { %p30_p0 = scmp.ne.s32.totalorder %s25_s13, 0 }
   0xb   :  { %29 = shalt.err (%p30_p0)  }

</bundles_post_ra>
